<compile_context>
chip_gen: v7x
topology: tpu7x:2x2x1
jax: 0.10.0
libtpu: 0.0.40
codegen_flags: <defaults>
</compile_context>

<pallas_src>
import jax
import jax.numpy as jnp
import numpy as np
from jax.experimental import pallas as pl
from jax.experimental.pallas import tpu as pltpu


def _attn_kernel(hidden_ref, enc_ref, lens_ref, w1t_ref, w2c_ref, w2h_ref,
                 x_ref, attn_ref):
    hidden = hidden_ref[...]            # (tB, H)   f32
    enc = enc_ref[...]                  # (tB, S, D) f32
    lens = lens_ref[...]                # (tB, 1)   int32
    w1t = w1t_ref[...]                  # (H, D)    l1.weight.T
    w2c = w2c_ref[...]                  # (D, D)    l2.weight[:, :D].T
    w2h = w2h_ref[...]                  # (H, D)    l2.weight[:, D:].T

    tB, S, D = enc.shape

    # x1 = l1(hidden): (tB, D)                                   [MXU, f32 acc]
    x1 = jnp.dot(hidden, w1t, preferred_element_type=jnp.float32)

    # att[b, s] = sum_d x1[b, d] * enc[b, s, d]                  [MXU, f32 acc]
    # q = 1 batched matmul (same form as the flash-attention reference kernel).
    att3 = jnp.einsum('bqd,bsd->bqs', x1[:, None, :], enc,
                      preferred_element_type=jnp.float32)        # (tB, 1, S)
    att = att3[:, 0, :]                 # -> dense (tB, S): batch on sublanes

    # Sequence mask + PyTorch quirk (`masked_att[masked_att == 0] = -1e10`
    # also clobbers valid positions whose raw score is exactly 0), fused into
    # a single select on the dense (tB, S) layout.
    pos = jax.lax.broadcasted_iota(jnp.int32, (tB, S), 1)
    keep = jnp.logical_and(pos < lens, att != 0.0)
    masked = jnp.where(keep, att, jnp.float32(-1.0e10))

    # Softmax over the sequence axis (lanes); dense vregs, exact normalization.
    m = jnp.max(masked, axis=-1, keepdims=True)
    e = jnp.exp(masked - m)
    denom = jnp.sum(e, axis=-1, keepdims=True)
    attn = e / denom                                             # (tB, S)
    attn_ref[...] = attn                                         # dense store

    # ctx[b, d] = sum_s attn[b, s] * enc[b, s, d]                [MXU, f32 acc]
    ctx = jnp.einsum('bqs,bsd->bqd', attn[:, None, :], enc,
                     preferred_element_type=jnp.float32)[:, 0, :]  # (tB, D)

    # x = tanh(l2(cat(ctx, hidden)))  -- concat folded into two matmuls [MXU]
    pre = (jnp.dot(ctx, w2c, preferred_element_type=jnp.float32)
           + jnp.dot(hidden, w2h, preferred_element_type=jnp.float32))
    x_ref[...] = jnp.tanh(pre)


def _vmem_limit_bytes():
    """Generation-aware scoped-VMEM limit with headroom.

    v5e/v6e (128 MiB physical) -> 96 MiB; v7x (64 MiB per TensorCore) -> 48 MiB.
    """
    cap = 64 * 1024 * 1024
    try:
        cap = int(pltpu.get_tpu_info().vmem_capacity_bytes)
    except Exception:
        pass
    return int(min(cap * 3 // 4, 96 * 1024 * 1024))


def _pick_batch_tile(B, S, D, H, vmem_limit):
    """Largest batch tile such that ALL double-buffered blocks fit the VMEM
    limit, with >= 2 (prefer >= 4) grid steps when B is large enough so the
    'parallel' batch axis can shard across both v7x TensorCores and the
    BlockSpec pipeline actually overlaps DMA with compute."""
    if B < 16:
        # Can't split: sub-8 sublane tiles would violate the (8,128) block rule.
        return B
    f32 = 4
    fixed = 2 * (2 * H * D + D * D) * f32          # weight blocks (2x buffered)
    headroom = 4 * 1024 * 1024                     # Mosaic scratch / spills
    per_row = 2 * (S * D * f32                     # encoder_outs block
                   + H * f32                       # hidden block
                   + 4                             # src_lens block
                   + D * f32                       # x output block
                   + S * f32)                      # attn output block
    budget = max(vmem_limit - fixed - headroom, per_row)
    tB = int(budget // per_row)
    tB = min(tB, max(8, B // 4))                   # >= 4 grid steps when possible
    tB = max(8, (tB // 8) * 8)                     # sublane-aligned
    while B % tB != 0 and tB > 8:                  # prefer uniform tiles
        tB -= 8
    return min(tB, B)


def attention_module(hidden, encoder_outs, src_lens, w1, w2):
    """hidden (B, H) f32, encoder_outs (B, S, D) f32, src_lens (B,) int
       (S must equal max(src_lens), as the PyTorch module requires),
       w1 = l1.weight (D, H), w2 = l2.weight (D, D + H).
       Returns (x (B, D) f32, attn_scores (S, B) f32), matching the module."""
    hidden = jnp.asarray(hidden, jnp.float32)
    encoder_outs = jnp.asarray(encoder_outs, jnp.float32)
    B, H = hidden.shape
    _, S, D = encoder_outs.shape

    # Pre-transpose / pre-split the (tiny) weights once so every in-kernel
    # matmul issues straight to the MXU with no in-kernel .T.
    w1t = jnp.asarray(w1, jnp.float32).T              # (H, D)
    w2c = jnp.asarray(w2[:, :D], jnp.float32).T       # (D, D)  acts on ctx
    w2h = jnp.asarray(w2[:, D:], jnp.float32).T       # (H, D)  acts on hidden
    lens2 = jnp.asarray(src_lens, jnp.int32).reshape(B, 1)

    vmem_limit = _vmem_limit_bytes()
    tB = _pick_batch_tile(B, S, D, H, vmem_limit)

    # Pad the batch (zeros) to a tile multiple so no tile reads undefined rows.
    Bp = pl.cdiv(B, tB) * tB
    if Bp != B:
        pad = Bp - B
        hidden_p = jnp.pad(hidden, ((0, pad), (0, 0)))
        enc_p = jnp.pad(encoder_outs, ((0, pad), (0, 0), (0, 0)))
        lens_p = jnp.pad(lens2, ((0, pad), (0, 0)))
    else:
        hidden_p, enc_p, lens_p = hidden, encoder_outs, lens2

    grid = (Bp // tB,)

    x, attn_bs = pl.pallas_call(
        _attn_kernel,
        grid=grid,
        in_specs=[
            pl.BlockSpec((tB, H), lambda b: (b, 0)),          # hidden
            pl.BlockSpec((tB, S, D), lambda b: (b, 0, 0)),    # encoder_outs
            pl.BlockSpec((tB, 1), lambda b: (b, 0)),          # src_lens
            pl.BlockSpec((H, D), lambda b: (0, 0)),           # w1t
            pl.BlockSpec((D, D), lambda b: (0, 0)),           # w2c
            pl.BlockSpec((H, D), lambda b: (0, 0)),           # w2h
        ],
        out_specs=(
            pl.BlockSpec((tB, D), lambda b: (b, 0)),          # x (context out)
            pl.BlockSpec((tB, S), lambda b: (b, 0)),          # attn, dense (B,S)
        ),
        out_shape=(
            jax.ShapeDtypeStruct((Bp, D), jnp.float32),
            jax.ShapeDtypeStruct((Bp, S), jnp.float32),
        ),
        compiler_params=pltpu.CompilerParams(
            dimension_semantics=("parallel",),        # shard batch across TCs
            vmem_limit_bytes=vmem_limit,
        ),
    )(hidden_p, enc_p, lens_p, w1t, w2c, w2h)

    # PyTorch returns attn_scores as (S, B); transpose outside the kernel so
    # in-kernel stores stay dense.
    x = x[:B]
    attn_sb = attn_bs[:B].T
    return x, attn_sb


def _reference(hidden, enc, src_lens, w1, w2):
    """Pure-JAX f32 reference mirroring the PyTorch module (incl. its quirk)."""
    x = hidden @ w1.T                                        # (B, D)
    att = jnp.einsum('bsd,bd->bs', enc, x)                   # (B, S)
    S = enc.shape[1]
    mask = (jnp.arange(S)[None, :] < src_lens[:, None]).astype(jnp.float32)
    masked = mask * att
    masked = jnp.where(masked == 0.0, -1.0e10, masked)
    attn = jax.nn.softmax(masked, axis=1)                    # softmax over S
    ctx = jnp.einsum('bs,bsd->bd', attn, enc)                # (B, D)
    out = jnp.tanh(jnp.concatenate([ctx, hidden], axis=1) @ w2.T)
    return out, attn.T                                       # attn as (S, B)


if __name__ == "__main__":
    B, S, H, D = 2, 8, 32, 16   # batch, seq (== max(src_lens)), hidden_dim, output_dim
    key = jax.random.PRNGKey(0)
    k1, k2, k3, k4 = jax.random.split(key, 4)

    hidden = jax.random.normal(k1, (B, H), dtype=jnp.float32)
    encoder_outs = jax.random.normal(k2, (B, S, D), dtype=jnp.float32)
    src_lens = jnp.array([S, 5], dtype=jnp.int32)   # max(src_lens) == S

    # torch nn.Linear(bias=False) default init: U(-1/sqrt(fan_in), 1/sqrt(fan_in))
    b1 = 1.0 / (H ** 0.5)
    w1 = jax.random.uniform(k3, (D, H), jnp.float32, -b1, b1)          # l1.weight
    b2 = 1.0 / ((H + D) ** 0.5)
    w2 = jax.random.uniform(k4, (D, D + H), jnp.float32, -b2, b2)      # l2.weight

    x_out, attn_scores = attention_module(hidden, encoder_outs, src_lens, w1, w2)
    jax.block_until_ready((x_out, attn_scores))

    assert x_out.shape == (B, D) and attn_scores.shape == (S, B)

    # Sanity check vs f32 reference.
    x_ref, attn_ref = _reference(hidden, encoder_outs, src_lens, w1, w2)
    np.testing.assert_allclose(np.asarray(attn_scores), np.asarray(attn_ref),
                               atol=2e-2, rtol=0)
    np.testing.assert_allclose(np.asarray(x_out), np.asarray(x_ref),
                               atol=2e-2, rtol=0)
    print("KERNEL_OK")
</pallas_src>

<mosaic_0001>
module attributes {stable_mosaic.version = 11 : i64} {
  func.func @_attn_kernel(%arg0: i32, %arg1: memref<2x32xf32, #tpu.memory_space<vmem>>, %arg2: memref<2x8x16xf32, #tpu.memory_space<vmem>>, %arg3: memref<2x1xi32, #tpu.memory_space<vmem>>, %arg4: memref<32x16xf32, #tpu.memory_space<vmem>>, %arg5: memref<16x16xf32, #tpu.memory_space<vmem>>, %arg6: memref<32x16xf32, #tpu.memory_space<vmem>>, %arg7: memref<2x16xf32, #tpu.memory_space<vmem>>, %arg8: memref<2x8xf32, #tpu.memory_space<vmem>>) attributes {dimension_semantics = [#tpu.dimension_semantics<parallel>], iteration_bounds = array<i64: 1>, scalar_prefetch = 0 : i64, scratch_operands = 0 : i64, tpu.core_type = #tpu.core_type<tc>, window_params = [{transform_indices = @transform_0, window_bounds = array<i64: 2, 32>}, {transform_indices = @transform_1, window_bounds = array<i64: 2, 8, 16>}, {transform_indices = @transform_2, window_bounds = array<i64: 2, 1>}, {pipeline_mode = #tpu.pipeline_mode<synchronous>, transform_indices = @transform_3, window_bounds = array<i64: 32, 16>}, {pipeline_mode = #tpu.pipeline_mode<synchronous>, transform_indices = @transform_4, window_bounds = array<i64: 16, 16>}, {pipeline_mode = #tpu.pipeline_mode<synchronous>, transform_indices = @transform_5, window_bounds = array<i64: 32, 16>}, {transform_indices = @transform_6, window_bounds = array<i64: 2, 16>}, {transform_indices = @transform_7, window_bounds = array<i64: 2, 8>}]} {
    %c0 = arith.constant 0 : index
    %c0_0 = arith.constant 0 : index
    %0 = vector.load %arg1[%c0, %c0_0] : memref<2x32xf32, #tpu.memory_space<vmem>>, vector<2x32xf32>
    %c0_1 = arith.constant 0 : index
    %c0_2 = arith.constant 0 : index
    %c0_3 = arith.constant 0 : index
    %1 = vector.load %arg2[%c0_1, %c0_2, %c0_3] : memref<2x8x16xf32, #tpu.memory_space<vmem>>, vector<2x8x16xf32>
    %c0_4 = arith.constant 0 : index
    %c0_5 = arith.constant 0 : index
    %2 = vector.load %arg3[%c0_4, %c0_5] : memref<2x1xi32, #tpu.memory_space<vmem>>, vector<2x1xi32>
    %c0_6 = arith.constant 0 : index
    %c0_7 = arith.constant 0 : index
    %3 = vector.load %arg4[%c0_6, %c0_7] : memref<32x16xf32, #tpu.memory_space<vmem>>, vector<32x16xf32>
    %c0_8 = arith.constant 0 : index
    %c0_9 = arith.constant 0 : index
    %4 = vector.load %arg5[%c0_8, %c0_9] : memref<16x16xf32, #tpu.memory_space<vmem>>, vector<16x16xf32>
    %c0_10 = arith.constant 0 : index
    %c0_11 = arith.constant 0 : index
    %5 = vector.load %arg6[%c0_10, %c0_11] : memref<32x16xf32, #tpu.memory_space<vmem>>, vector<32x16xf32>
    %cst = arith.constant dense<0.000000e+00> : vector<2x16xf32>
    %6 = tpu.matmul %0, %3, %cst {dimension_numbers = #tpu.dot_dimension_numbers<[1], [0], [0], [1], [0, 0, 1, 1], [], []>} : vector<2x32xf32>, vector<32x16xf32>, vector<2x16xf32> -> vector<2x16xf32>
    %7 = vector.shape_cast %6 : vector<2x16xf32> to vector<2x1x16xf32>
    "tpu.trace_start"() <{level = 10 : i32, message = "bqd,bsd->bqs"}> : () -> ()
    %cst_12 = arith.constant dense<0.000000e+00> : vector<2x1x8xf32>
    %8 = tpu.matmul %7, %1, %cst_12 {dimension_numbers = #tpu.dot_dimension_numbers<[2], [2], [1], [1], [0, 0, 0, 1, 1, 1], [0], [0]>} : vector<2x1x16xf32>, vector<2x8x16xf32>, vector<2x1x8xf32> -> vector<2x1x8xf32>
    "tpu.trace_stop"() : () -> ()
    %9 = vector.shape_cast %8 : vector<2x1x8xf32> to vector<2x8xf32>
    %10 = tpu.iota {dimensions = array<i32: 1>} : vector<2x8xi32>
    %11 = vector.broadcast %2 : vector<2x1xi32> to vector<2x8xi32>
    %12 = arith.cmpi slt, %10, %11 : vector<2x8xi32>
    %cst_13 = arith.constant 0.000000e+00 : f32
    %13 = vector.broadcast %cst_13 : f32 to vector<2x8xf32>
    %14 = arith.cmpf one, %9, %13 : vector<2x8xf32>
    %15 = arith.andi %12, %14 : vector<2x8xi1>
    %cst_14 = arith.constant -1.000000e+10 : f32
    %16 = vector.broadcast %cst_14 : f32 to vector<2x8xf32>
    %17 = arith.select %15, %9, %16 : vector<2x8xi1>, vector<2x8xf32>
    %cst_15 = arith.constant dense<0xFF800000> : vector<2xf32>
    %18 = vector.multi_reduction <maximumf>, %17, %cst_15 [1] : vector<2x8xf32> to vector<2xf32>
    %19 = vector.shape_cast %18 : vector<2xf32> to vector<2x1xf32>
    %20 = vector.broadcast %19 : vector<2x1xf32> to vector<2x8xf32>
    %21 = arith.subf %17, %20 : vector<2x8xf32>
    %22 = math.exp %21 : vector<2x8xf32>
    %cst_16 = arith.constant dense<0.000000e+00> : vector<2xf32>
    %23 = vector.multi_reduction <add>, %22, %cst_16 [1] : vector<2x8xf32> to vector<2xf32>
    %24 = vector.shape_cast %23 : vector<2xf32> to vector<2x1xf32>
    %25 = vector.broadcast %24 : vector<2x1xf32> to vector<2x8xf32>
    %26 = arith.divf %22, %25 : vector<2x8xf32>
    %c0_17 = arith.constant 0 : index
    %c0_18 = arith.constant 0 : index
    %27 = vector.load %arg8[%c0_17, %c0_18] : memref<2x8xf32, #tpu.memory_space<vmem>>, vector<2x8xf32>
    tpu.vector_store %arg8[%c0_17, %c0_18], %26 {strides = array<i32>} : memref<2x8xf32, #tpu.memory_space<vmem>>, vector<2x8xf32>,
    %28 = vector.shape_cast %26 : vector<2x8xf32> to vector<2x1x8xf32>
    "tpu.trace_start"() <{level = 10 : i32, message = "bqs,bsd->bqd"}> : () -> ()
    %cst_19 = arith.constant dense<0.000000e+00> : vector<2x1x16xf32>
    %29 = tpu.matmul %28, %1, %cst_19 {dimension_numbers = #tpu.dot_dimension_numbers<[2], [1], [1], [2], [0, 0, 0, 1, 1, 2], [0], [0]>} : vector<2x1x8xf32>, vector<2x8x16xf32>, vector<2x1x16xf32> -> vector<2x1x16xf32>
    "tpu.trace_stop"() : () -> ()
    %30 = vector.shape_cast %29 : vector<2x1x16xf32> to vector<2x16xf32>
    %cst_20 = arith.constant dense<0.000000e+00> : vector<2x16xf32>
    %31 = tpu.matmul %30, %4, %cst_20 {dimension_numbers = #tpu.dot_dimension_numbers<[1], [0], [0], [1], [0, 0, 1, 1], [], []>} : vector<2x16xf32>, vector<16x16xf32>, vector<2x16xf32> -> vector<2x16xf32>
    %cst_21 = arith.constant dense<0.000000e+00> : vector<2x16xf32>
    %32 = tpu.matmul %0, %5, %cst_21 {dimension_numbers = #tpu.dot_dimension_numbers<[1], [0], [0], [1], [0, 0, 1, 1], [], []>} : vector<2x32xf32>, vector<32x16xf32>, vector<2x16xf32> -> vector<2x16xf32>
    %33 = arith.addf %31, %32 : vector<2x16xf32>
    %34 = math.tanh %33 : vector<2x16xf32>
    %c0_22 = arith.constant 0 : index
    %c0_23 = arith.constant 0 : index
    %35 = vector.load %arg7[%c0_22, %c0_23] : memref<2x16xf32, #tpu.memory_space<vmem>>, vector<2x16xf32>
    tpu.vector_store %arg7[%c0_22, %c0_23], %34 {strides = array<i32>} : memref<2x16xf32, #tpu.memory_space<vmem>>, vector<2x16xf32>,
    return
  }
  func.func @transform_0(%arg0: i32) -> (i32, i32) {
    %c0_i32 = arith.constant 0 : i32
    %c0_i32_0 = arith.constant 0 : i32
    return %arg0, %c0_i32 : i32, i32
  }
  func.func @transform_1(%arg0: i32) -> (i32, i32, i32) {
    %c0_i32 = arith.constant 0 : i32
    %c0_i32_0 = arith.constant 0 : i32
    %c0_i32_1 = arith.constant 0 : i32
    return %arg0, %c0_i32, %c0_i32_0 : i32, i32, i32
  }
  func.func @transform_2(%arg0: i32) -> (i32, i32) {
    %c0_i32 = arith.constant 0 : i32
    %c0_i32_0 = arith.constant 0 : i32
    return %arg0, %c0_i32 : i32, i32
  }
  func.func @transform_3(%arg0: i32) -> (i32, i32) {
    %c0_i32 = arith.constant 0 : i32
    %c0_i32_0 = arith.constant 0 : i32
    %c0_i32_1 = arith.constant 0 : i32
    return %c0_i32, %c0_i32_0 : i32, i32
  }
  func.func @transform_4(%arg0: i32) -> (i32, i32) {
    %c0_i32 = arith.constant 0 : i32
    %c0_i32_0 = arith.constant 0 : i32
    %c0_i32_1 = arith.constant 0 : i32
    return %c0_i32, %c0_i32_0 : i32, i32
  }
  func.func @transform_5(%arg0: i32) -> (i32, i32) {
    %c0_i32 = arith.constant 0 : i32
    %c0_i32_0 = arith.constant 0 : i32
    %c0_i32_1 = arith.constant 0 : i32
    return %c0_i32, %c0_i32_0 : i32, i32
  }
  func.func @transform_6(%arg0: i32) -> (i32, i32) {
    %c0_i32 = arith.constant 0 : i32
    %c0_i32_0 = arith.constant 0 : i32
    return %arg0, %c0_i32 : i32, i32
  }
  func.func @transform_7(%arg0: i32) -> (i32, i32) {
    %c0_i32 = arith.constant 0 : i32
    %c0_i32_0 = arith.constant 0 : i32
    return %arg0, %c0_i32 : i32, i32
  }
}

</mosaic_0001>

<bundles_post_ra>
// kernel: tpu_custom_call.1
= control target key start
LH: loop header
LB: loop body
LE: loop exit
PB: predicated region body
PF: predicated region fallthrough
CT: control target
= control target key end

     0   :  { %13 = vsyncpa [#allocation3], 0  ;;  %v826_v3 = vmov 0.0|0.0   ;;  %vm827_vm0 = vmmov 0   ;;  %v828_v6 = vmov 0.0   ;;  %s979_s0 = inlined_call_operand.vmem [shape: f32[2,32], index: 0, kind: input, shape index: {}]   ;;  %s980_s1 = inlined_call_operand.vmem [shape: f32[2,8,16], index: 1, kind: input, shape index: {}]   ;;  %s981_s2 = inlined_call_operand.vmem [shape: s32[2,1], index: 2, kind: input, shape index: {}]   ;;  %s982_s3 = inlined_call_operand.vmem [shape: f32[32,16], index: 3, kind: input, shape index: {}]   ;;  %s983_s4 = inlined_call_operand.vmem [shape: f32[16,16], index: 4, kind: input, shape index: {}]   ;;  %s984_s5 = inlined_call_operand.vmem [shape: f32[32,16], index: 5, kind: input, shape index: {}]   ;;  %s985_s6 = inlined_call_operand.hbm [shape: f32[2,16], index: 6, kind: output, shape index: {0}]   ;;  %s986_s7 = inlined_call_operand.hbm [shape: f32[2,8], index: 7, kind: output, shape index: {1}]  }
   0x1   :  { %v31_v0 = vld [vmem:[%s982_s3] sm:$0xff]  ;;  %v32_v1 = vld [vmem:[%s982_s3 + $0x8] sm:$0xff]  ;;  %v33_v2 = vld [vmem:[%s982_s3 + $0x10] sm:$0xff]  ;;  %747 = vmatprep.subr.bf16.mxu1 %v826_v3  ;;  %706 = vmatprep.mubr.msk.f32.mxu1 %vm827_vm0, %v828_v6 }
   0x2   :  { %v748_v4 = vpack.c.bf16 %v32_v1, %v31_v0  ;;  %v34_v5 = vld [vmem:[%s982_s3 + $0x18] sm:$0xff] }
   0x3   :  { %14 = vsyncpa [#allocation5], 0  ;;  %719 = vmatprep.subr.mxu0 %v828_v6  ;;  %721 = vmatprep.mubr.msk.f32.mxu0 %vm827_vm0, %v828_v6  ;;  %v751_v7 = vpack.c.bf16 %v34_v5, %v33_v2  ;;  %v895_v8 = vld [vmem:[%s979_s0] sm:$0x3]  ;;  %vm41_vm1 = vcmask 261120   ;;  %vm138_vm2 = vcmask 130048   ;;  %v119_v14 = vlaneseq }
   0x4   :  { %749 = vmatpush3.bf16.msra.mxu1 %v748_v4  ;;  %v28_v9 = vld [vmem:[%s980_s1] sm:$0xff]  ;;  %v829_v11 = vmov 0   ;;  %v830_v12 = vmov 1966171168   ;;  %v29_v23 = vld [vmem:[%s980_s1 + $0x8] sm:$0xff]  ;;  %vm300_vm3 = vcmask 1041409  }
   0x5   :  { %750 = vmatprep.subr.bf16.mxu1 %v826_v3  ;;  %720 = vmatpush3.msra.mxu0 %v28_v9  ;;  %v30_v10 = vld [vmem:[%s981_s2] sm:$0x3]  ;;  %v117_v13 = vunpack.c.l.s4 %v830_v12  ;;  %v120_v16 = vshrl.u32 %v119_v14, 7  ;;  %v290_v28 = vand.u32 127, %v119_v14  ;;  %vm310_vm8 = vcmask 58368   ;;  %v38_v51 = vld [vmem:[%s984_s5 + $0x8] sm:$0xff] }
   0x6   :  { %724 = vmatprep.subr.mxu0 %v828_v6  ;;  %771 = vset.pattern.permute.xlu0 %v829_v11  ;;  %vm346_vm10 = vcmask 64512   ;;  %v37_v50 = vld [vmem:[%s984_s5] sm:$0xff]  ;;  %v39_v54 = vld [vmem:[%s984_s5 + $0x10] sm:$0xff]  ;;  %v40_v55 = vld [vmem:[%s984_s5 + $0x18] sm:$0xff]  ;;  %s831_s24 = smov [#allocation4]  }
   0x7   :  { %292 = vperm.xlu0 %771, %v30_v10   ;;  %v118_v15 = vunpack.c.0.s8 %v117_v13  ;;  %v754_v52 = vpack.c.bf16 %v38_v51, %v37_v50  ;;  %v757_v56 = vpack.c.bf16 %v40_v55, %v39_v54  ;;  %v35_v57 = vld [vmem:[%s983_s4] sm:$0xff]  ;;  %v36_v58 = vld [vmem:[%s983_s4 + $0x8] sm:$0xff]  ;;  %s656_s25 = sshll.u32 %s831_s24, 4  ;;  %s657_s25 = int_to_ptr.vmem [resolvable:$true] %s656_s25 }
   0x8   :  { %752 = vmatpush3.bf16.msra.mxu1 %v751_v7  ;;  %v760_v59 = vpack.c.bf16 %v36_v58, %v35_v57  ;;  %s778_s26 = scalar_lea.vmem %s657_s25, 32  ;;  %p783_p1 = scmp.lt.s32.totalorder %s657_s25, %s657_s25 }
   0x9   :  { %709 = vmatprep.subr.mxu1 %v828_v6  ;;  %v121_v17 = vsub.s32 %v118_v15, %v120_v16  ;;  %p779_p0 = scmp.ne.s32.totalorder %s657_s25, %s778_s26  ;;  %p784_p2 = scmp.lt.s32.totalorder %s778_s26, %s778_s26 }
   0xb   :  { %707 = vmatmul.mubr.msk.f32.vlgmr.msra.gmra.mrb[0].mxu1 %vm41_vm1, %v895_v8  ;;  %p785_p3 = por %p784_p2, %p783_p1 }
   0xc   :  { %711 = vmatprep.mubr.msk.f32.mxu1 %vm827_vm0, %v828_v6 }
   0xd   :  { %p786_p4 = pnand %p785_p3, %p779_p0 }
  0x11   :  { %710 = vmatpush3.xpose.msk.msra.mxu1 %vm138_vm2, %v28_v9 }
  0x12   :  { %714 = vmatprep.subr.mxu1 %v828_v6 }
  0x86   :  { %v293_v31 = vpop.permute.xlu0 %292 }
  0x87   :  { %vm294_vm6 = vcmp.lt.s32.totalorder %v290_v28, %v293_v31 }
  0xde   :  { %v111_v18 = vpop.f32.mrb[0].mxu1 }
  0xdf   :  { %v122_v19 = vrot.slane %v111_v18, %v121_v17  ;;  %v708_v20 = vpop.f32.mrb[1].mxu1 }
  0xe1   :  { %v123_v21 = vcombine.high %v122_v19, %v122_v19  ;;  %v130_v22 = vrot.slane %v122_v19, %v121_v17 }
  0xe3   :  { %712 = vmatmul.mubr.msk.f32.vlgmr.msra.gmra.mrb[2].mxu1 %vm138_vm2, %v130_v22  ;;  %v137_v24 = vrot.slane %v123_v21, %v121_v17 }
  0xe4   :  { %715 = vmatpush3.xpose.msk.msra.mxu1 %vm138_vm2, %v29_v23  ;;  %716 = vmatprep.mubr.msk.f32.mxu1 %vm827_vm0, %v828_v6 }
  0xe7   :  { %717 = vmatmul.mubr.msk.f32.vlgmr.msra.gmra.mrb[4].mxu1 %vm138_vm2, %v137_v24 }
 0x1b6   :  { %v210_v25 = vpop.f32.mrb[2].mxu1 }
 0x1b7   :  { %v713_v26 = vpop.f32.mrb[3].mxu1  ;;  %vm295_vm4 = vcmp.ne.f32.partialorder %v210_v25, 0.0 }
 0x1b8   :  { %v297_v35 = vsel %vm295_vm4, 1, %v829_v11 }
 0x1ba   :  { %v285_v27 = vpop.f32.mrb[4].mxu1 }
 0x1bb   :  { %vm296_vm5 = vcmp.ne.f32.partialorder %v285_v27, 0.0  ;;  %v306_v29 = vrot.slane %v285_v27, 7  ;;  %v718_v30 = vpop.f32.mrb[5].mxu1 }
 0x1bc   :  { %v298_v32 = vsel %vm296_vm5, 1, %v829_v11 }
 0x1bd   :  { %v299_v33 = vrot.slane %v298_v32, 7  ;;  %v307_v34 = vsel %vm300_vm3, %v306_v29, %v210_v25 }
 0x1bf   :  { %v301_v36 = vsel %vm300_vm3, %v299_v33, %v297_v35 }
 0x1c0   :  { %vm302_vm7 = vcmp.ne.s32.totalorder %v301_v36, 0 }
 0x1c1   :  { %vm303_vm9 = vmand %vm294_vm6, %vm302_vm7 }
 0x1c2   :  { %v309_v37 = vsel %vm303_vm9, %v307_v34, -1e+10 }
 0x1c3   :  { %v311_v38 = vsel %vm310_vm8, %v309_v37, -inf }
 0x1c4   :  { %312 = vmax.xlane.f32.xlu0 %v311_v38 }
 0x251   :  { %v313_v39 = vpop.xlane.xlu0 %312 }
 0x252   :  { %v314_v40 = vsub.f32 %v309_v37, %v313_v39 }
 0x254   :  { %v315_v41 = vmul.f32 1.442695, %v314_v40 }
 0x256   :  { %772 = vpow2.f32 %v315_v41 }
 0x260   :  { %v773_v42 = vpop.eup %772 }
 0x261   :  { %v317_v43 = vsel %vm310_vm8, %v773_v42, 0.0 }
 0x262   :  { %318 = vadd.xlane.f32.xlu1 %v317_v43 }
 0x2ef   :  { %v319_v44 = vpop.xlane.xlu1 %318 }
 0x2f0   :  { %774 = vrcp.f32 %v319_v44 }
 0x2fa   :  { %v775_v45 = vpop.eup %774 }
 0x2fb   :  { %v321_v46 = vmul.f32 %v775_v45, %v773_v42 }
 0x2fd   :  { %322 = vst.msk [vmem:[#allocation4] sm:$0x3] %vm310_vm8, %v321_v46  ;;  %v330_v47 = vrot.slane %v321_v46, %v121_v17 }
 0x2ff   :  { %v331_v48 = vcombine.high %v330_v47, %v330_v47  ;;  %v338_v49 = vrot.slane %v330_v47, %v121_v17 }
 0x301   :  { %722 = vmatmul.mubr.msk.f32.vlgmr.msra.gmra.mrb[0].mxu0 %vm346_vm10, %v338_v49  ;;  %v345_v53 = vrot.slane %v331_v48, %v121_v17 }
 0x302   :  { %725 = vmatpush3.msra.mxu0 %v29_v23  ;;  %726 = vmatprep.mubr.msk.f32.mxu0 %vm827_vm0, %v828_v6 }
 0x303   :  { %753 = vmatprep.subr.bf16.mxu0 %v826_v3 }
 0x305   :  { %727 = vmatmul.mubr.msk.f32.vlgmr.msra.gmra.mrb[2].mxu0 %vm346_vm10, %v345_v53 }
 0x306   :  { %755 = vmatpush3.bf16.msra.mxu0 %v754_v52  ;;  %737 = vmatprep.mubr.msk.f32.mxu0 %vm827_vm0, %v828_v6 }
 0x307   :  { %756 = vmatprep.subr.bf16.mxu0 %v826_v3 }
 0x30a   :  { %758 = vmatpush3.bf16.msra.mxu0 %v757_v56 }
 0x30b   :  { %759 = vmatprep.subr.bf16.mxu0 %v826_v3 }
 0x30d   :  { %738 = vmatmul.mubr.msk.f32.vlgmr.msra.gmra.mrb[4].mxu0 %vm41_vm1, %v895_v8 }
 0x30e   :  { %744 = vmatprep.mubr.msk.f32.mxu0 %vm827_vm0, %v828_v6  ;;  %761 = vmatpush3.bf16.msra.mxu0 %v760_v59 }
 0x3d4   :  { %v415_v60 = vpop.f32.mrb[0].mxu0 }
 0x3d5   :  { %v723_v61 = vpop.f32.mrb[1].mxu0 }
 0x3d8   :  { %v487_v62 = vpop.f32.mrb[2].mxu0 }
 0x3d9   :  { %v563_v63 = vrot.slane %v487_v62, 7  ;;  %v728_v0 = vpop.f32.mrb[3].mxu0 }
 0x3db   :  { %v564_v1 = vsel %vm300_vm3, %v563_v63, %v415_v60 }
 0x3dc   :  { %745 = vmatmul.mubr.msk.f32.vlgmr.msra.gmra.mrb[4].mxu0 %vm138_vm2, %v564_v1 }
 0x3dd   :  { %789 = shalt.err (!%p786_p4)
}
 0x3de   :  { %s790_s28 = scalar_lea.hbm %s986_s7, 32 }
 0x3df   :  { %p791_p5 = scmp.ne.s32.totalorder %s986_s7, %s790_s28  ;;  %p794_p6 = scmp.lt.u32.totalorder %s790_s28, %s986_s7 }
 0x3e1   :  { %p796_p7 = pnand %p794_p6, %p791_p5 }
 0x3e3   :  { %799 = shalt.err (!%p796_p7)
}
 0x3e4   :  { %659 = dma.vmem_to_hbm [thread:$0]  %s657_s25, 32, %s986_s7, [#allocation5]   ;;  %vm638_vm11 = vcmask 123904  }
 0x3e5   :  { %s832_s11 = smov [#allocation2]  }
 0x3e6   :  { %s646_s0 = sshll.u32 %s832_s11, 4  ;;  %s647_s0 = int_to_ptr.vmem [resolvable:$true] %s646_s0 }
 0x3e7   :  { %s800_s12 = scalar_lea.vmem %s647_s0, 32  ;;  %p805_p9 = scmp.lt.s32.totalorder %s647_s0, %s647_s0 }
 0x3e8   :  { %p801_p8 = scmp.ne.s32.totalorder %s647_s0, %s800_s12  ;;  %p806_p10 = scmp.lt.s32.totalorder %s800_s12, %s800_s12 }
 0x3ea   :  { %p807_p11 = por %p806_p10, %p805_p9 }
 0x3ec   :  { %p808_p12 = pnand %p807_p11, %p801_p8 }
 0x4af   :  { %v633_v2 = vpop.f32.mrb[4].mxu0 }
 0x4b0   :  { %776 = vtanh.f32 %v633_v2  ;;  %v746_v3 = vpop.f32.mrb[5].mxu0 }
 0x4ba   :  { %v777_v4 = vpop.eup %776 }
 0x4bb   :  { %639 = vst.msk [vmem:[#allocation2] sm:$0x3] %vm638_vm11, %v777_v4 }
 0x4bc   :  { %811 = shalt.err (!%p808_p12)
}
 0x4bd   :  { %s812_s7 = scalar_lea.hbm %s985_s6, 32 }
 0x4be   :  { %p813_p13 = scmp.ne.s32.totalorder %s985_s6, %s812_s7  ;;  %p816_p0 = scmp.lt.u32.totalorder %s812_s7, %s985_s6 }
 0x4c0   :  { %p818_p1 = pnand %p816_p0, %p813_p13 }
 0x4c2   :  { %821 = shalt.err (!%p818_p1)
}
 0x4c3   :  { %649 = dma.vmem_to_hbm [thread:$0]  %s647_s0, 32, %s985_s6, [#allocation3]  }
 0x4c4   :  { %822 = dma.done.wait [#allocation3], 32  }
 0x4c5   :  { %823 = vsyncadd [#allocation3], 4294967264 }
 0x4c6   :  { %824 = dma.done.wait [#allocation5], 32  }
 0x4c7   :  { %825 = vsyncadd [#allocation5], 4294967264 }
 0x4c8   :  { %666 = vsyncpa [#allocation3], 1 }
 0x4c9   :  { %667 = vsyncpa [#allocation5], 1 }

</bundles_post_ra>
